<compile_context>
chip_gen: v5e
topology: v5e:2x2
jax: 0.10.0
libtpu: 0.0.40
codegen_flags: <defaults>
</compile_context>

<pallas_src>
import functools

import jax
import jax.numpy as jnp
from jax import lax
from jax.experimental import pallas as pl
from jax.experimental.pallas import tpu as pltpu


# ----------------------------- Pallas kernel -----------------------------

def _matmul_tb(a, b):
    """a @ b.T without materializing the transpose: contract last dims of both operands."""
    return lax.dot_general(a, b, dimension_numbers=(((1,), (1,)), ((), ())),
                           preferred_element_type=jnp.float32)


def fused_attention_kernel(xk_ref, xq_ref, qw_ref, qb_ref, kvw_ref, kvb_ref,
                           pw_ref, pb_ref, out_ref, attn_ref, *,
                           num_heads, head_dim, scale, compute_dtype):
    # Per-batch-element shapes (batch squeezed out by the BlockSpec):
    #   xk_ref: (Nk, Ck)   xq_ref: (Nq, Cq)
    #   qw_ref: (HD, Cq)   kvw_ref: (2*HD, Ck)   pw_ref: (HD, HD)   biases: (1, *) fp32
    #   out_ref: (Nq, HD)  attn_ref: (H, Nq, Nk)
    HD = num_heads * head_dim
    cd = compute_dtype

    # ---- q / kv projections: bf16 MXU operands, fp32 accumulation, fp32 bias add ----
    q = _matmul_tb(xq_ref[...].astype(cd), qw_ref[...]) + qb_ref[...]    # (Nq, HD)  fp32
    kv = _matmul_tb(xk_ref[...].astype(cd), kvw_ref[...]) + kvb_ref[...]  # (Nk, 2*HD) fp32

    q = q.astype(cd)
    kv = kv.astype(cd)

    # ---- per-head attention (heads unrolled at trace time; grid is only over batch) ----
    o_heads = []
    for h in range(num_heads):
        lo, hi = h * head_dim, (h + 1) * head_dim
        qh = q[:, lo:hi]                        # (Nq, D)
        kh = kv[:, lo:hi]                       # (Nk, D)  k = first HD features of kv proj
        vh = kv[:, HD + lo:HD + hi]             # (Nk, D)  v = second HD features of kv proj

        s = _matmul_tb(qh, kh) * scale          # (Nq, Nk) fp32; K consumed as trans_b
        m = jnp.max(s, axis=-1, keepdims=True)
        p = jnp.exp(s - m)
        p = p * pl.reciprocal(jnp.sum(p, axis=-1, keepdims=True), approx=True)
        attn_ref[h] = p.astype(attn_ref.dtype)

        o_heads.append(jnp.dot(p.astype(cd), vh, preferred_element_type=jnp.float32))

    # torch: (attn @ v).transpose(1, 2).reshape(B, Nq, -1)  ==  concat heads along features.
    o = jnp.concatenate(o_heads, axis=-1)       # (Nq, HD) fp32, lane-dense

    # ---- output projection ----
    y = _matmul_tb(o.astype(cd), pw_ref[...]) + pb_ref[...]
    out_ref[...] = y.astype(out_ref.dtype)


def fused_attention(x, x_q, q_w, q_b, kv_w, kv_b, proj_w, proj_b, *,
                    num_heads, scale, compute_dtype=jnp.bfloat16):
    """x: (B, Nk, Ck), x_q: (B, Nq, Cq) -> (out (B, Nq, out_dim), attn (B, H, Nq, Nk)).

    Weights are expected in nn.Linear layout (out_features, in_features), already cast to
    `compute_dtype`; biases stay fp32.
    """
    B, Nk, Ck = x.shape
    _, Nq, Cq = x_q.shape
    out_dim = q_w.shape[0]
    head_dim = out_dim // num_heads

    kern = functools.partial(fused_attention_kernel, num_heads=num_heads,
                             head_dim=head_dim, scale=scale, compute_dtype=compute_dtype)

    qb2 = q_b.reshape(1, out_dim).astype(jnp.float32)
    kvb2 = kv_b.reshape(1, 2 * out_dim).astype(jnp.float32)
    pb2 = proj_b.reshape(1, out_dim).astype(jnp.float32)

    out, attn = pl.pallas_call(
        kern,
        out_shape=(
            jax.ShapeDtypeStruct((B, Nq, out_dim), x_q.dtype),
            jax.ShapeDtypeStruct((B, num_heads, Nq, Nk), jnp.float32),
        ),
        grid_spec=pltpu.PrefetchScalarGridSpec(
            num_scalar_prefetch=0,
            grid=(B,),
            in_specs=[
                pl.BlockSpec((None, Nk, Ck), lambda b: (b, 0, 0)),        # x   (key/value source)
                pl.BlockSpec((None, Nq, Cq), lambda b: (b, 0, 0)),        # x_q (query source)
                pl.BlockSpec((out_dim, Cq), lambda b: (0, 0)),            # q_w    (VMEM-resident)
                pl.BlockSpec((1, out_dim), lambda b: (0, 0)),             # q_b
                pl.BlockSpec((2 * out_dim, Ck), lambda b: (0, 0)),        # kv_w   (VMEM-resident)
                pl.BlockSpec((1, 2 * out_dim), lambda b: (0, 0)),         # kv_b
                pl.BlockSpec((out_dim, out_dim), lambda b: (0, 0)),       # proj_w (VMEM-resident)
                pl.BlockSpec((1, out_dim), lambda b: (0, 0)),             # proj_b
            ],
            out_specs=[
                pl.BlockSpec((None, Nq, out_dim), lambda b: (b, 0, 0)),           # out (lane-dense H*D)
                pl.BlockSpec((None, num_heads, Nq, Nk), lambda b: (b, 0, 0, 0)),  # attn
            ],
        ),
        compiler_params=pltpu.CompilerParams(
            dimension_semantics=("parallel",),
            vmem_limit_bytes=32 * 1024 * 1024,
        ),
    )(x, x_q, q_w, qb2, kv_w, kvb2, proj_w, pb2)
    return out, attn


# ----------------------------- module wrapper -----------------------------

class AttentionPallas:
    def __init__(self, in_dim_k, in_dim_q, out_dim, num_heads=8,
                 qkv_bias=False, qk_scale=None, compute_dtype=jnp.bfloat16, key=None):
        self.num_heads = num_heads
        head_dim = out_dim // num_heads
        self.scale = qk_scale or head_dim ** (-0.5)
        self.out_dim = out_dim
        self.compute_dtype = compute_dtype

        key = jax.random.PRNGKey(42) if key is None else key
        k1, k2, k3, k4 = jax.random.split(key, 4)
        # Deterministic synthetic parameter init (shapes match nn.Linear: (out, in)).
        self.q_w = (jax.random.normal(k1, (out_dim, in_dim_q), jnp.float32)
                    * (1.0 / jnp.sqrt(in_dim_q)))
        self.q_b = jnp.zeros((out_dim,), jnp.float32)            # qkv_bias=False
        self.kv_w = (jax.random.normal(k2, (out_dim * 2, in_dim_k), jnp.float32)
                     * (1.0 / jnp.sqrt(in_dim_k)))
        self.kv_b = jnp.zeros((out_dim * 2,), jnp.float32)       # qkv_bias=False
        self.proj_w = (jax.random.normal(k3, (out_dim, out_dim), jnp.float32)
                       * (1.0 / jnp.sqrt(out_dim)))
        self.proj_b = (jax.random.normal(k4, (out_dim,), jnp.float32)
                       * (1.0 / jnp.sqrt(out_dim)))

        # Cast weights to the MXU compute dtype ONCE at init (halves weight DMA + VMEM,
        # removes per-call casts inside the kernel).  Biases stay fp32.
        self.q_w_c = self.q_w.astype(compute_dtype)
        self.kv_w_c = self.kv_w.astype(compute_dtype)
        self.proj_w_c = self.proj_w.astype(compute_dtype)

    def __call__(self, x, x_q):
        # x: (B, Nk, Ck), x_q: (B, Nq, Cq)
        return fused_attention(
            x, x_q, self.q_w_c, self.q_b, self.kv_w_c, self.kv_b,
            self.proj_w_c, self.proj_b,
            num_heads=self.num_heads, scale=self.scale,
            compute_dtype=self.compute_dtype)


# ----------------------------- reference (plain JAX, fp32) -----------------------------

def reference_forward(mod, x, x_q):
    B, Nk, Ck = x.shape
    _, Nq, Cq = x_q.shape
    H = mod.num_heads
    D = mod.out_dim // H
    q = x_q @ mod.q_w.T + mod.q_b
    kv = x @ mod.kv_w.T + mod.kv_b
    q = q.reshape(B, Nq, H, D).transpose(0, 2, 1, 3)
    kv = kv.reshape(B, Nk, 2, H, D).transpose(2, 0, 3, 1, 4)
    k, v = kv[0], kv[1]
    attn = jnp.einsum("bhqd,bhkd->bhqk", q, k) * mod.scale
    attn = jax.nn.softmax(attn, axis=-1)
    out = jnp.einsum("bhqk,bhkd->bhqd", attn, v)
    out = out.transpose(0, 2, 1, 3).reshape(B, Nq, mod.out_dim)
    out = out @ mod.proj_w.T + mod.proj_b
    return out, attn


# ----------------------------- main -----------------------------

if __name__ == "__main__":
    key = jax.random.PRNGKey(0)
    kx, kq, kp = jax.random.split(key, 3)

    B, Nk, Nq = 2, 16, 8
    in_dim_k, in_dim_q, out_dim, num_heads = 24, 32, 32, 4

    x = jax.random.normal(kx, (B, Nk, in_dim_k), jnp.float32)
    x_q = jax.random.normal(kq, (B, Nq, in_dim_q), jnp.float32)

    mod = AttentionPallas(in_dim_k, in_dim_q, out_dim, num_heads=num_heads, key=kp)

    out, attn = mod(x, x_q)
    out = jax.block_until_ready(out)
    attn = jax.block_until_ready(attn)

    # Sanity check vs. plain-JAX fp32 reference of the PyTorch forward.
    # Tolerances account for bf16 MXU operands (fp32 accumulation) and the approx EUP
    # reciprocal used in the softmax denominator.
    ref_out, ref_attn = reference_forward(mod, x, x_q)
    assert out.shape == (B, Nq, out_dim)
    assert attn.shape == (B, num_heads, Nq, Nk)
    assert jnp.allclose(attn, ref_attn, atol=3e-2, rtol=3e-2)
    assert jnp.allclose(out, ref_out, atol=8e-2, rtol=5e-2)

    print("KERNEL_OK")
</pallas_src>

<mosaic_0001>
module attributes {stable_mosaic.version = 11 : i64} {
  func.func @fused_attention_kernel(%arg0: i32, %arg1: memref<1x16x24xf32, #tpu.memory_space<vmem>>, %arg2: memref<1x8x32xf32, #tpu.memory_space<vmem>>, %arg3: memref<32x32xbf16, #tpu.memory_space<vmem>>, %arg4: memref<1x32xf32, #tpu.memory_space<vmem>>, %arg5: memref<64x24xbf16, #tpu.memory_space<vmem>>, %arg6: memref<1x64xf32, #tpu.memory_space<vmem>>, %arg7: memref<32x32xbf16, #tpu.memory_space<vmem>>, %arg8: memref<1x32xf32, #tpu.memory_space<vmem>>, %arg9: memref<1x8x32xf32, #tpu.memory_space<vmem>>, %arg10: memref<1x4x8x16xf32, #tpu.memory_space<vmem>>) attributes {dimension_semantics = [#tpu.dimension_semantics<parallel>], iteration_bounds = array<i64: 2>, scalar_prefetch = 0 : i64, scratch_operands = 0 : i64, tpu.core_type = #tpu.core_type<tc>, window_params = [{transform_indices = @transform_0, window_bounds = array<i64: 1, 16, 24>}, {transform_indices = @transform_1, window_bounds = array<i64: 1, 8, 32>}, {pipeline_mode = #tpu.pipeline_mode<synchronous>, transform_indices = @transform_2, window_bounds = array<i64: 32, 32>}, {pipeline_mode = #tpu.pipeline_mode<synchronous>, transform_indices = @transform_3, window_bounds = array<i64: 1, 32>}, {pipeline_mode = #tpu.pipeline_mode<synchronous>, transform_indices = @transform_4, window_bounds = array<i64: 64, 24>}, {pipeline_mode = #tpu.pipeline_mode<synchronous>, transform_indices = @transform_5, window_bounds = array<i64: 1, 64>}, {pipeline_mode = #tpu.pipeline_mode<synchronous>, transform_indices = @transform_6, window_bounds = array<i64: 32, 32>}, {pipeline_mode = #tpu.pipeline_mode<synchronous>, transform_indices = @transform_7, window_bounds = array<i64: 1, 32>}, {transform_indices = @transform_8, window_bounds = array<i64: 1, 8, 32>}, {transform_indices = @transform_9, window_bounds = array<i64: 1, 4, 8, 16>}]} {
    %c0 = arith.constant 0 : index
    %c0_0 = arith.constant 0 : index
    %c0_1 = arith.constant 0 : index
    %0 = vector.load %arg2[%c0, %c0_0, %c0_1] : memref<1x8x32xf32, #tpu.memory_space<vmem>>, vector<1x8x32xf32>
    %1 = vector.shape_cast %0 : vector<1x8x32xf32> to vector<8x32xf32>
    %2 = arith.truncf %1 : vector<8x32xf32> to vector<8x32xbf16>
    %c0_2 = arith.constant 0 : index
    %c0_3 = arith.constant 0 : index
    %3 = vector.load %arg3[%c0_2, %c0_3] : memref<32x32xbf16, #tpu.memory_space<vmem>>, vector<32x32xbf16>
    %cst = arith.constant dense<0.000000e+00> : vector<8x32xf32>
    %4 = tpu.matmul %2, %3, %cst {dimension_numbers = #tpu.dot_dimension_numbers<[1], [1], [0], [0], [0, 0, 1, 0], [], []>} : vector<8x32xbf16>, vector<32x32xbf16>, vector<8x32xf32> -> vector<8x32xf32>
    %c0_4 = arith.constant 0 : index
    %c0_5 = arith.constant 0 : index
    %5 = vector.load %arg4[%c0_4, %c0_5] : memref<1x32xf32, #tpu.memory_space<vmem>>, vector<1x32xf32>
    %6 = vector.broadcast %5 : vector<1x32xf32> to vector<8x32xf32>
    %7 = arith.addf %4, %6 : vector<8x32xf32>
    %c0_6 = arith.constant 0 : index
    %c0_7 = arith.constant 0 : index
    %c0_8 = arith.constant 0 : index
    %8 = vector.load %arg1[%c0_6, %c0_7, %c0_8] : memref<1x16x24xf32, #tpu.memory_space<vmem>>, vector<1x16x24xf32>
    %9 = vector.shape_cast %8 : vector<1x16x24xf32> to vector<16x24xf32>
    %10 = arith.truncf %9 : vector<16x24xf32> to vector<16x24xbf16>
    %c0_9 = arith.constant 0 : index
    %c0_10 = arith.constant 0 : index
    %11 = vector.load %arg5[%c0_9, %c0_10] : memref<64x24xbf16, #tpu.memory_space<vmem>>, vector<64x24xbf16>
    %cst_11 = arith.constant dense<0.000000e+00> : vector<16x64xf32>
    %12 = tpu.matmul %10, %11, %cst_11 {dimension_numbers = #tpu.dot_dimension_numbers<[1], [1], [0], [0], [0, 0, 1, 0], [], []>} : vector<16x24xbf16>, vector<64x24xbf16>, vector<16x64xf32> -> vector<16x64xf32>
    %c0_12 = arith.constant 0 : index
    %c0_13 = arith.constant 0 : index
    %13 = vector.load %arg6[%c0_12, %c0_13] : memref<1x64xf32, #tpu.memory_space<vmem>>, vector<1x64xf32>
    %14 = vector.broadcast %13 : vector<1x64xf32> to vector<16x64xf32>
    %15 = arith.addf %12, %14 : vector<16x64xf32>
    %16 = arith.truncf %7 : vector<8x32xf32> to vector<8x32xbf16>
    %17 = arith.truncf %15 : vector<16x64xf32> to vector<16x64xbf16>
    %18 = vector.extract_strided_slice %16 {offsets = [0, 0], sizes = [8, 8], strides = [1, 1]} : vector<8x32xbf16> to vector<8x8xbf16>
    %19 = vector.extract_strided_slice %17 {offsets = [0, 0], sizes = [16, 8], strides = [1, 1]} : vector<16x64xbf16> to vector<16x8xbf16>
    %20 = vector.extract_strided_slice %17 {offsets = [0, 32], sizes = [16, 8], strides = [1, 1]} : vector<16x64xbf16> to vector<16x8xbf16>
    %cst_14 = arith.constant dense<0.000000e+00> : vector<8x16xf32>
    %21 = tpu.matmul %18, %19, %cst_14 {dimension_numbers = #tpu.dot_dimension_numbers<[1], [1], [0], [0], [0, 0, 1, 0], [], []>} : vector<8x8xbf16>, vector<16x8xbf16>, vector<8x16xf32> -> vector<8x16xf32>
    %cst_15 = arith.constant 0.353553385 : f32
    %22 = vector.broadcast %cst_15 : f32 to vector<8x16xf32>
    %23 = arith.mulf %21, %22 : vector<8x16xf32>
    %cst_16 = arith.constant dense<0xFF800000> : vector<8xf32>
    %24 = vector.multi_reduction <maximumf>, %23, %cst_16 [1] : vector<8x16xf32> to vector<8xf32>
    %25 = vector.shape_cast %24 : vector<8xf32> to vector<8x1xf32>
    %26 = vector.broadcast %25 : vector<8x1xf32> to vector<8x16xf32>
    %27 = arith.subf %23, %26 : vector<8x16xf32>
    %28 = math.exp %27 : vector<8x16xf32>
    %cst_17 = arith.constant dense<0.000000e+00> : vector<8xf32>
    %29 = vector.multi_reduction <add>, %28, %cst_17 [1] : vector<8x16xf32> to vector<8xf32>
    %30 = vector.shape_cast %29 : vector<8xf32> to vector<8x1xf32>
    %31 = tpu.reciprocal %30 {approx = true} : vector<8x1xf32> -> vector<8x1xf32>
    %32 = vector.broadcast %31 : vector<8x1xf32> to vector<8x16xf32>
    %33 = arith.mulf %28, %32 : vector<8x16xf32>
    %c0_18 = arith.constant 0 : index
    %c0_19 = arith.constant 0 : index
    %c0_20 = arith.constant 0 : index
    %c0_21 = arith.constant 0 : index
    %34 = vector.load %arg10[%c0_18, %c0_19, %c0_20, %c0_21] : memref<1x4x8x16xf32, #tpu.memory_space<vmem>>, vector<1x1x8x16xf32>
    %35 = vector.shape_cast %34 : vector<1x1x8x16xf32> to vector<8x16xf32>
    %36 = vector.shape_cast %33 : vector<8x16xf32> to vector<1x1x8x16xf32>
    tpu.vector_store %arg10[%c0_18, %c0_19, %c0_20, %c0_21], %36 {strides = array<i32>} : memref<1x4x8x16xf32, #tpu.memory_space<vmem>>, vector<1x1x8x16xf32>,
    %37 = arith.truncf %33 : vector<8x16xf32> to vector<8x16xbf16>
    %cst_22 = arith.constant dense<0.000000e+00> : vector<8x8xf32>
    %38 = tpu.matmul %37, %20, %cst_22 {dimension_numbers = #tpu.dot_dimension_numbers<[1], [0], [0], [1], [0, 0, 1, 1], [], []>} : vector<8x16xbf16>, vector<16x8xbf16>, vector<8x8xf32> -> vector<8x8xf32>
    %39 = vector.extract_strided_slice %16 {offsets = [0, 8], sizes = [8, 8], strides = [1, 1]} : vector<8x32xbf16> to vector<8x8xbf16>
    %40 = vector.extract_strided_slice %17 {offsets = [0, 8], sizes = [16, 8], strides = [1, 1]} : vector<16x64xbf16> to vector<16x8xbf16>
    %41 = vector.extract_strided_slice %17 {offsets = [0, 40], sizes = [16, 8], strides = [1, 1]} : vector<16x64xbf16> to vector<16x8xbf16>
    %cst_23 = arith.constant dense<0.000000e+00> : vector<8x16xf32>
    %42 = tpu.matmul %39, %40, %cst_23 {dimension_numbers = #tpu.dot_dimension_numbers<[1], [1], [0], [0], [0, 0, 1, 0], [], []>} : vector<8x8xbf16>, vector<16x8xbf16>, vector<8x16xf32> -> vector<8x16xf32>
    %cst_24 = arith.constant 0.353553385 : f32
    %43 = vector.broadcast %cst_24 : f32 to vector<8x16xf32>
    %44 = arith.mulf %42, %43 : vector<8x16xf32>
    %cst_25 = arith.constant dense<0xFF800000> : vector<8xf32>
    %45 = vector.multi_reduction <maximumf>, %44, %cst_25 [1] : vector<8x16xf32> to vector<8xf32>
    %46 = vector.shape_cast %45 : vector<8xf32> to vector<8x1xf32>
    %47 = vector.broadcast %46 : vector<8x1xf32> to vector<8x16xf32>
    %48 = arith.subf %44, %47 : vector<8x16xf32>
    %49 = math.exp %48 : vector<8x16xf32>
    %cst_26 = arith.constant dense<0.000000e+00> : vector<8xf32>
    %50 = vector.multi_reduction <add>, %49, %cst_26 [1] : vector<8x16xf32> to vector<8xf32>
    %51 = vector.shape_cast %50 : vector<8xf32> to vector<8x1xf32>
    %52 = tpu.reciprocal %51 {approx = true} : vector<8x1xf32> -> vector<8x1xf32>
    %53 = vector.broadcast %52 : vector<8x1xf32> to vector<8x16xf32>
    %54 = arith.mulf %49, %53 : vector<8x16xf32>
    %c0_27 = arith.constant 0 : index
    %c1 = arith.constant 1 : index
    %c0_28 = arith.constant 0 : index
    %c0_29 = arith.constant 0 : index
    %55 = vector.load %arg10[%c0_27, %c1, %c0_28, %c0_29] : memref<1x4x8x16xf32, #tpu.memory_space<vmem>>, vector<1x1x8x16xf32>
    %56 = vector.shape_cast %55 : vector<1x1x8x16xf32> to vector<8x16xf32>
    %57 = vector.shape_cast %54 : vector<8x16xf32> to vector<1x1x8x16xf32>
    tpu.vector_store %arg10[%c0_27, %c1, %c0_28, %c0_29], %57 {strides = array<i32>} : memref<1x4x8x16xf32, #tpu.memory_space<vmem>>, vector<1x1x8x16xf32>,
    %58 = arith.truncf %54 : vector<8x16xf32> to vector<8x16xbf16>
    %cst_30 = arith.constant dense<0.000000e+00> : vector<8x8xf32>
    %59 = tpu.matmul %58, %41, %cst_30 {dimension_numbers = #tpu.dot_dimension_numbers<[1], [0], [0], [1], [0, 0, 1, 1], [], []>} : vector<8x16xbf16>, vector<16x8xbf16>, vector<8x8xf32> -> vector<8x8xf32>
    %60 = vector.extract_strided_slice %16 {offsets = [0, 16], sizes = [8, 8], strides = [1, 1]} : vector<8x32xbf16> to vector<8x8xbf16>
    %61 = vector.extract_strided_slice %17 {offsets = [0, 16], sizes = [16, 8], strides = [1, 1]} : vector<16x64xbf16> to vector<16x8xbf16>
    %62 = vector.extract_strided_slice %17 {offsets = [0, 48], sizes = [16, 8], strides = [1, 1]} : vector<16x64xbf16> to vector<16x8xbf16>
    %cst_31 = arith.constant dense<0.000000e+00> : vector<8x16xf32>
    %63 = tpu.matmul %60, %61, %cst_31 {dimension_numbers = #tpu.dot_dimension_numbers<[1], [1], [0], [0], [0, 0, 1, 0], [], []>} : vector<8x8xbf16>, vector<16x8xbf16>, vector<8x16xf32> -> vector<8x16xf32>
    %cst_32 = arith.constant 0.353553385 : f32
    %64 = vector.broadcast %cst_32 : f32 to vector<8x16xf32>
    %65 = arith.mulf %63, %64 : vector<8x16xf32>
    %cst_33 = arith.constant dense<0xFF800000> : vector<8xf32>
    %66 = vector.multi_reduction <maximumf>, %65, %cst_33 [1] : vector<8x16xf32> to vector<8xf32>
    %67 = vector.shape_cast %66 : vector<8xf32> to vector<8x1xf32>
    %68 = vector.broadcast %67 : vector<8x1xf32> to vector<8x16xf32>
    %69 = arith.subf %65, %68 : vector<8x16xf32>
    %70 = math.exp %69 : vector<8x16xf32>
    %cst_34 = arith.constant dense<0.000000e+00> : vector<8xf32>
    %71 = vector.multi_reduction <add>, %70, %cst_34 [1] : vector<8x16xf32> to vector<8xf32>
    %72 = vector.shape_cast %71 : vector<8xf32> to vector<8x1xf32>
    %73 = tpu.reciprocal %72 {approx = true} : vector<8x1xf32> -> vector<8x1xf32>
    %74 = vector.broadcast %73 : vector<8x1xf32> to vector<8x16xf32>
    %75 = arith.mulf %70, %74 : vector<8x16xf32>
    %c0_35 = arith.constant 0 : index
    %c2 = arith.constant 2 : index
    %c0_36 = arith.constant 0 : index
    %c0_37 = arith.constant 0 : index
    %76 = vector.load %arg10[%c0_35, %c2, %c0_36, %c0_37] : memref<1x4x8x16xf32, #tpu.memory_space<vmem>>, vector<1x1x8x16xf32>
    %77 = vector.shape_cast %76 : vector<1x1x8x16xf32> to vector<8x16xf32>
    %78 = vector.shape_cast %75 : vector<8x16xf32> to vector<1x1x8x16xf32>
    tpu.vector_store %arg10[%c0_35, %c2, %c0_36, %c0_37], %78 {strides = array<i32>} : memref<1x4x8x16xf32, #tpu.memory_space<vmem>>, vector<1x1x8x16xf32>,
    %79 = arith.truncf %75 : vector<8x16xf32> to vector<8x16xbf16>
    %cst_38 = arith.constant dense<0.000000e+00> : vector<8x8xf32>
    %80 = tpu.matmul %79, %62, %cst_38 {dimension_numbers = #tpu.dot_dimension_numbers<[1], [0], [0], [1], [0, 0, 1, 1], [], []>} : vector<8x16xbf16>, vector<16x8xbf16>, vector<8x8xf32> -> vector<8x8xf32>
    %81 = vector.extract_strided_slice %16 {offsets = [0, 24], sizes = [8, 8], strides = [1, 1]} : vector<8x32xbf16> to vector<8x8xbf16>
    %82 = vector.extract_strided_slice %17 {offsets = [0, 24], sizes = [16, 8], strides = [1, 1]} : vector<16x64xbf16> to vector<16x8xbf16>
    %83 = vector.extract_strided_slice %17 {offsets = [0, 56], sizes = [16, 8], strides = [1, 1]} : vector<16x64xbf16> to vector<16x8xbf16>
    %cst_39 = arith.constant dense<0.000000e+00> : vector<8x16xf32>
    %84 = tpu.matmul %81, %82, %cst_39 {dimension_numbers = #tpu.dot_dimension_numbers<[1], [1], [0], [0], [0, 0, 1, 0], [], []>} : vector<8x8xbf16>, vector<16x8xbf16>, vector<8x16xf32> -> vector<8x16xf32>
    %cst_40 = arith.constant 0.353553385 : f32
    %85 = vector.broadcast %cst_40 : f32 to vector<8x16xf32>
    %86 = arith.mulf %84, %85 : vector<8x16xf32>
    %cst_41 = arith.constant dense<0xFF800000> : vector<8xf32>
    %87 = vector.multi_reduction <maximumf>, %86, %cst_41 [1] : vector<8x16xf32> to vector<8xf32>
    %88 = vector.shape_cast %87 : vector<8xf32> to vector<8x1xf32>
    %89 = vector.broadcast %88 : vector<8x1xf32> to vector<8x16xf32>
    %90 = arith.subf %86, %89 : vector<8x16xf32>
    %91 = math.exp %90 : vector<8x16xf32>
    %cst_42 = arith.constant dense<0.000000e+00> : vector<8xf32>
    %92 = vector.multi_reduction <add>, %91, %cst_42 [1] : vector<8x16xf32> to vector<8xf32>
    %93 = vector.shape_cast %92 : vector<8xf32> to vector<8x1xf32>
    %94 = tpu.reciprocal %93 {approx = true} : vector<8x1xf32> -> vector<8x1xf32>
    %95 = vector.broadcast %94 : vector<8x1xf32> to vector<8x16xf32>
    %96 = arith.mulf %91, %95 : vector<8x16xf32>
    %c0_43 = arith.constant 0 : index
    %c3 = arith.constant 3 : index
    %c0_44 = arith.constant 0 : index
    %c0_45 = arith.constant 0 : index
    %97 = vector.load %arg10[%c0_43, %c3, %c0_44, %c0_45] : memref<1x4x8x16xf32, #tpu.memory_space<vmem>>, vector<1x1x8x16xf32>
    %98 = vector.shape_cast %97 : vector<1x1x8x16xf32> to vector<8x16xf32>
    %99 = vector.shape_cast %96 : vector<8x16xf32> to vector<1x1x8x16xf32>
    tpu.vector_store %arg10[%c0_43, %c3, %c0_44, %c0_45], %99 {strides = array<i32>} : memref<1x4x8x16xf32, #tpu.memory_space<vmem>>, vector<1x1x8x16xf32>,
    %100 = arith.truncf %96 : vector<8x16xf32> to vector<8x16xbf16>
    %cst_46 = arith.constant dense<0.000000e+00> : vector<8x8xf32>
    %101 = tpu.matmul %100, %83, %cst_46 {dimension_numbers = #tpu.dot_dimension_numbers<[1], [0], [0], [1], [0, 0, 1, 1], [], []>} : vector<8x16xbf16>, vector<16x8xbf16>, vector<8x8xf32> -> vector<8x8xf32>
    %102 = tpu.concatenate %38, %59, %80, %101 in 1 : vector<8x8xf32>, vector<8x8xf32>, vector<8x8xf32>, vector<8x8xf32> -> vector<8x32xf32>
    %103 = arith.truncf %102 : vector<8x32xf32> to vector<8x32xbf16>
    %c0_47 = arith.constant 0 : index
    %c0_48 = arith.constant 0 : index
    %104 = vector.load %arg7[%c0_47, %c0_48] : memref<32x32xbf16, #tpu.memory_space<vmem>>, vector<32x32xbf16>
    %cst_49 = arith.constant dense<0.000000e+00> : vector<8x32xf32>
    %105 = tpu.matmul %103, %104, %cst_49 {dimension_numbers = #tpu.dot_dimension_numbers<[1], [1], [0], [0], [0, 0, 1, 0], [], []>} : vector<8x32xbf16>, vector<32x32xbf16>, vector<8x32xf32> -> vector<8x32xf32>
    %c0_50 = arith.constant 0 : index
    %c0_51 = arith.constant 0 : index
    %106 = vector.load %arg8[%c0_50, %c0_51] : memref<1x32xf32, #tpu.memory_space<vmem>>, vector<1x32xf32>
    %107 = vector.broadcast %106 : vector<1x32xf32> to vector<8x32xf32>
    %108 = arith.addf %105, %107 : vector<8x32xf32>
    %c0_52 = arith.constant 0 : index
    %c0_53 = arith.constant 0 : index
    %c0_54 = arith.constant 0 : index
    %109 = vector.load %arg9[%c0_52, %c0_53, %c0_54] : memref<1x8x32xf32, #tpu.memory_space<vmem>>, vector<1x8x32xf32>
    %110 = vector.shape_cast %109 : vector<1x8x32xf32> to vector<8x32xf32>
    %111 = vector.shape_cast %108 : vector<8x32xf32> to vector<1x8x32xf32>
    tpu.vector_store %arg9[%c0_52, %c0_53, %c0_54], %111 {strides = array<i32>} : memref<1x8x32xf32, #tpu.memory_space<vmem>>, vector<1x8x32xf32>,
    return
  }
  func.func @transform_0(%arg0: i32) -> (i32, i32, i32) {
    %c0_i32 = arith.constant 0 : i32
    %c0_i32_0 = arith.constant 0 : i32
    %c0_i32_1 = arith.constant 0 : i32
    return %arg0, %c0_i32, %c0_i32_0 : i32, i32, i32
  }
  func.func @transform_1(%arg0: i32) -> (i32, i32, i32) {
    %c0_i32 = arith.constant 0 : i32
    %c0_i32_0 = arith.constant 0 : i32
    %c0_i32_1 = arith.constant 0 : i32
    return %arg0, %c0_i32, %c0_i32_0 : i32, i32, i32
  }
  func.func @transform_2(%arg0: i32) -> (i32, i32) {
    %c0_i32 = arith.constant 0 : i32
    %c0_i32_0 = arith.constant 0 : i32
    %c0_i32_1 = arith.constant 0 : i32
    return %c0_i32, %c0_i32_0 : i32, i32
  }
  func.func @transform_3(%arg0: i32) -> (i32, i32) {
    %c0_i32 = arith.constant 0 : i32
    %c0_i32_0 = arith.constant 0 : i32
    %c0_i32_1 = arith.constant 0 : i32
    return %c0_i32, %c0_i32_0 : i32, i32
  }
  func.func @transform_4(%arg0: i32) -> (i32, i32) {
    %c0_i32 = arith.constant 0 : i32
    %c0_i32_0 = arith.constant 0 : i32
    %c0_i32_1 = arith.constant 0 : i32
    return %c0_i32, %c0_i32_0 : i32, i32
  }
  func.func @transform_5(%arg0: i32) -> (i32, i32) {
    %c0_i32 = arith.constant 0 : i32
    %c0_i32_0 = arith.constant 0 : i32
    %c0_i32_1 = arith.constant 0 : i32
    return %c0_i32, %c0_i32_0 : i32, i32
  }
  func.func @transform_6(%arg0: i32) -> (i32, i32) {
    %c0_i32 = arith.constant 0 : i32
    %c0_i32_0 = arith.constant 0 : i32
    %c0_i32_1 = arith.constant 0 : i32
    return %c0_i32, %c0_i32_0 : i32, i32
  }
  func.func @transform_7(%arg0: i32) -> (i32, i32) {
    %c0_i32 = arith.constant 0 : i32
    %c0_i32_0 = arith.constant 0 : i32
    %c0_i32_1 = arith.constant 0 : i32
    return %c0_i32, %c0_i32_0 : i32, i32
  }
  func.func @transform_8(%arg0: i32) -> (i32, i32, i32) {
    %c0_i32 = arith.constant 0 : i32
    %c0_i32_0 = arith.constant 0 : i32
    %c0_i32_1 = arith.constant 0 : i32
    return %arg0, %c0_i32, %c0_i32_0 : i32, i32, i32
  }
  func.func @transform_9(%arg0: i32) -> (i32, i32, i32, i32) {
    %c0_i32 = arith.constant 0 : i32
    %c0_i32_0 = arith.constant 0 : i32
    %c0_i32_1 = arith.constant 0 : i32
    %c0_i32_2 = arith.constant 0 : i32
    return %arg0, %c0_i32, %c0_i32_0, %c0_i32_1 : i32, i32, i32, i32
  }
}

</mosaic_0001>

<bundles_post_ra>
// kernel: tpu_custom_call.1
= control target key start
LH: loop header
LB: loop body
LE: loop exit
PB: predicated region body
PF: predicated region fallthrough
CT: control target
= control target key end

     0   :  { %s1764_s0 = inlined_call_operand.vmem [shape: f32[2,16,24], index: 0, kind: input, shape index: {}]   ;;  %s1765_s1 = inlined_call_operand.hbm [shape: f32[2,8,32], index: 1, kind: input, shape index: {}]   ;;  %s1766_s2 = inlined_call_operand.hbm [shape: bf16[32,32], index: 2, kind: input, shape index: {}]   ;;  %s1767_s3 = inlined_call_operand.hbm [shape: f32[1,32], index: 3, kind: input, shape index: {}]   ;;  %s1768_s4 = inlined_call_operand.vmem [shape: bf16[64,24], index: 4, kind: input, shape index: {}]   ;;  %s1769_s5 = inlined_call_operand.hbm [shape: f32[1,64], index: 5, kind: input, shape index: {}]   ;;  %s1770_s6 = inlined_call_operand.vmem [shape: bf16[32,32], index: 6, kind: input, shape index: {}]   ;;  %s1771_s7 = inlined_call_operand.vmem [shape: f32[1,32], index: 7, kind: input, shape index: {}]   ;;  %s1772_s8 = inlined_call_operand.hbm [shape: f32[2,8,32], index: 8, kind: output, shape index: {0}]   ;;  %s1773_s9 = inlined_call_operand.hbm [shape: f32[2,4,8,16], index: 9, kind: output, shape index: {1}]  }
   0x1   :  { %1776 = sst [smem:[#allocation18_spill]] %s1764_s0 }
   0x2   :  { %1777 = sst [smem:[#allocation19_spill]] %s1766_s2 }
   0x3   :  { %1778 = sst [smem:[#allocation20_spill]] %s1767_s3 }
   0x4   :  { %1779 = sst [smem:[#allocation21_spill]] %s1769_s5 }
   0x5   :  { %15 = vsyncpa [#allocation3], 0 }
   0x6   :  { %17 = vsyncpa [#allocation3 + $0x1], 0 }
   0x7   :  { %18 = vsyncpa [#allocation6], 0 }
   0x8   :  { %19 = vsyncpa [#allocation9], 0 }
   0x9   :  { %20 = vsyncpa [#allocation4], 0 }
   0xa   :  { %22 = vsyncpa [#allocation4 + $0x1], 0 }
   0xb   :  { %23 = vsyncpa [#allocation12], 0 }
   0xc   :  { %25 = vsyncpa [#allocation12 + $0x1], 0  ;;  %s1499_s30 = smov 0   ;;  %s1501_s10 = smov 0  }
   0xd   :  { %s1503_s11 = smov 0   ;;  %s1505_s12 = smov 0  }
   0xe LB: > { %s1780_s2 = sld [smem:[#allocation19_spill]]  ;;  %s1523_s16 = sadd.s32 4294967295, %s1431_s12   ;;  %s1431_s12 = sphi %s1505_s12, %s1796_s12   ;;  %s1427_s11 = sphi %s1503_s11, %s1795_s11   ;;  %s1423_s10 = sphi %s1501_s10, %s1794_s10   ;;  %s1419_s30 = sphi %s1499_s30, %s1793_s30  }
   0xf   : > { %p1012_p0 = scmp.ge.s32.totalorder %s1431_s12, 1  ;;  %p78_p1 = scmp.eq.s32.totalorder %s1523_s16, 0 }
  0x10   : > { %p266_p2 = scmp.lt.s32.totalorder %s1431_s12, 3  ;;  %s1433_s18 = smov [#allocation5]  }
  0x11   : > { %s279_s19 = sshll.u32 %s1433_s18, 4  ;;  %s1782_s3 = sld [smem:[#allocation20_spill]]  ;;  %s280_s19 = int_to_ptr.vmem [resolvable:$true] %s279_s19 }
  0x12   : > { %p1528_p3 = pnand %p1012_p0, %p266_p2  ;;  %s1784_s5 = sld [smem:[#allocation21_spill]] }
  0x13   : > { %s1434_s27 = smov [#allocation7]   ;;  %s1435_s29 = smov 64  }
  0x14   : > { %s277_s15 = sshll.u32 %s1780_s2, 4  ;;  %p1109_p4 = pneg %p1528_p3  ;;  %s278_s15 = int_to_ptr.hbm [resolvable:$true] %s277_s15 }
  0x15   : > { %s294_s28 = sshll.u32 %s1434_s27, 4  ;;  %s1436_s13 = smov 4   ;;  %s295_s28 = int_to_ptr.vmem [resolvable:$true] %s294_s28 }
  0x16   : > { %p1540_p6 = pnand %p1109_p4, %p78_p1  ;;  %s1437_s14 = smov [#allocation8]  }
  0x17   : > { %s292_s22 = sshll.u32 %s1782_s3, 4  ;;  %s309_s18 = sshll.u32 %s1437_s14, 4  ;;  %s293_s22 = int_to_ptr.hbm [resolvable:$true] %s292_s22  ;;  %s310_s18 = int_to_ptr.vmem [resolvable:$true] %s309_s18 }
  0x18   : > { %s307_s26 = sshll.u32 %s1784_s5, 4  ;;  %s1011_s20 = sadd.s32 4294967294, %s1431_s12   ;;  %s308_s26 = int_to_ptr.hbm [resolvable:$true] %s307_s26 }
  0x19   : > { %1112 = dma.hbm_to_vmem [thread:$0]  (!%p1540_p6), %s278_s15, 256, %s280_s19, [#allocation6], %s1435_s29, %s1435_s29, %s1436_s13  }
  0x1a   : > { %1115 = dma.hbm_to_vmem [thread:$0]  (!%p1540_p6), %s293_s22, 16, %s295_s28, [#allocation6]  }
  0x1b   : > { %1118 = dma.hbm_to_vmem [thread:$0]  (!%p1540_p6), %s308_s26, 16, %s310_s18, [#allocation9]  }
  0x1c   : > { %s1555_s21 = sadd.s32 1, %s1431_s12   ;;  %s64_s24 = sadd.s32 1, %s1427_s11 }
  0x1d   : > { %s61_s15 = ssub.s32 %s1431_s12, %s1555_s21  ;;  %p71_p7 = scmp.ne.s32.totalorder %s1427_s11, %s1423_s10 }
  0x1e   : > { %p62_p8 = scmp.eq.s32.totalorder %s61_s15, 0  ;;  %p72_p9 = scmp.eq.s32.totalorder %s1431_s12, 0 }
  0x1f   : > { %p77_p10 = scmp.ne.s32.totalorder %s1423_s10, %s1419_s30  ;;  %p227_p11 = scmp.eq.s32.totalorder %s1523_s16, 1 }
  0x20   : > { %s1567_s19 = scalar_select %p62_p8, %s1427_s11, %s64_s24  }
  0x21   : > { %p1571_p12 = por %p78_p1, %p77_p10  ;;  %p1575_p13 = por %p227_p11, %p71_p7 }
  0x22   : > { %p233_p0 = scmp.eq.s32.totalorder %s1011_s20, 1  ;;  %p73_p2 = por %p72_p9, %p71_p7 }
  0x23   : > { %s334_s25 = sand.u32 1, %s1427_s11   ;;  %p1133_p6 = scmp.lt.s32.totalorder %s1431_s12, 2 }
  0x24   : > { %p1580_p4 = por %p233_p0, %p77_p10  ;;  %s1017_s27 = sshll.u32 %s334_s25, 3 }
  0x25   : > { %s1018_s28 = sshll.u32 %s1431_s12, 3  ;;  %s338_s24 = scalar_lea.vmem [#allocation2], %s1017_s27 }
  0x26   : > { %s342_s14 = scalar_lea.hbm %s1765_s1, %s1018_s28  ;;  %s346_s15 = sshll.u32 %s338_s24, 4  ;;  %s347_s15 = int_to_ptr.vmem [resolvable:$true] %s346_s15 }
  0x27   : > { %s344_s18 = sshll.u32 %s342_s14, 4  ;;  %p1589_p8 = pnand %p1133_p6, %p73_p2  ;;  %s345_s18 = int_to_ptr.hbm [resolvable:$true] %s344_s18 }
  0x28   : > { %s335_s2 = scalar_lea.sflag [#allocation3], %s334_s25  ;;  %s1295_s3 = sshra.s32 %s345_s18, 4  ;;  %s1296_s3 = int_to_ptr.hbm [resolvable:$true] %s1295_s3 }
  0x29   : > { %s1297_s5 = scalar_lea.hbm %s1296_s3, 8  ;;  %p1299_p9 = pneg %p1589_p8 }
  0x2a   : > { %p1298_p7 = scmp.ne.s32.totalorder %s1296_s3, %s1297_s5  ;;  %s1302_s27 = scalar_lea.hbm %s1765_s1, 16 }
  0x2b   : > { %p1303_p0 = scmp.lt.s32.totalorder %s1296_s3, %s1765_s1  ;;  %p1304_p2 = scmp.lt.s32.totalorder %s1302_s27, %s1297_s5 }
  0x2c   : > { %p1300_p10 = pnand %p1299_p9, %p1298_p7 }
  0x2d   : > { %p1305_p6 = por %p1304_p2, %p1303_p0 }
  0x2e   : > { %p1301_p11 = pneg %p1300_p10 }
  0x30   : > { %p1306_p5 = pnand %p1305_p6, %p1301_p11 }
  0x32   : > { %1309 = shalt.err (!%p1306_p5)
}
  0x33   : > { %1122 = dma.hbm_to_vmem [thread:$0]  (!%p1589_p8), %s345_s18, 128, %s347_s15, %s335_s2  }
  0x34   : > { %355 = sbr.rel (%p1528_p3) target bundleno = 1834 (0x72a), region = 52  ;;  %s1606_s25 = sand.u32 (!%p1528_p3), 1, %s1423_s10  }
  0x35   : > { %s1774_s24 = sshll.u32 (!%p1528_p3), %s1606_s25, 3  ;;  %s358_s28 = scalar_lea.sflag (!%p1528_p3), [#allocation3], %s1606_s25 }
  0x36   : > { %s361_s3 = scalar_lea.vmem (!%p1528_p3), [#allocation2], %s1774_s24 }
  0x39   : > { %1398 = dma.done.wait (%p1571_p12), %s358_s28, 128  }
  0x3a   : > { %1400 = vsyncadd (%p1571_p12), %s358_s28, 4294967168 }
  0x3b   : > { %1402 = dma.done.wait (%p78_p1), [#allocation6], 272  }
  0x3c   : > { %1404 = vsyncadd (%p78_p1), [#allocation6], 4294967024 }
  0x3d   : > { %1406 = dma.done.wait (%p78_p1), [#allocation9], 16  }
  0x3e   : > { %1408 = vsyncadd (%p78_p1), [#allocation9], 4294967280  ;;  %vm506_vm0 = vcmask 195584   ;;  %v1087_v0 = vld [vmem:[%s1768_s4 + $0x18] sm:$0xff]  ;;  %vm448_vm1 = vcmask 261120   ;;  %v1086_v4 = vld [vmem:[%s1768_s4 + $0x10] sm:$0xff] }
  0x3f   : > { %v1083_v1 = vld [vmem:[#allocation5 + $0x8] sm:$0xff]  ;;  %v520_v2 = vsel %vm506_vm0, %v1087_v0, 0  ;;  %v1082_v5 = vld [vmem:[#allocation5] sm:$0xff]  ;;  %v517_v6 = vsel %vm506_vm0, %v1086_v4, 0  ;;  %v1085_v8 = vld [vmem:[%s1768_s4 + $0x8] sm:$0xff]  ;;  %p422_p1 = scmp.lt.s32.totalorder %s1523_s16, 1 }
  0x40   : > { %526 = vmatpush.bf16.xpose.msra.mxu1 %v520_v2  ;;  %v456_v3 = vsel %vm448_vm1, %v1083_v1, 0  ;;  %v453_v7 = vsel %vm448_vm1, %v1082_v5, 0  ;;  %v428_v9 = vld [vmem:[%s361_s3] sm:$0xff]  ;;  %v514_v11 = vsel %vm506_vm0, %v1085_v8, 0  ;;  %s1789_s0 = sld [smem:[#allocation18_spill]]  ;;  %s1438_s3 = smov 120  }
  0x41   : > { %464 = vmatpush.bf16.xpose.msra.mxu0 %v456_v3  ;;  %v429_v10 = vpack.c.bf16 %v428_v9, %v428_v9  ;;  %s423_s20 = scalar_select %p422_p1, %s1523_s16, 1  ;;  %v1084_v12 = vld [vmem:[%s1768_s4] sm:$0xff]  ;;  %vm544_vm2 = vcmask 64512   ;;  %vm565_vm3 = vcmask 130048  }
  0x42   : > { %v511_v13 = vsel %vm506_vm0, %v1084_v12, 0  ;;  %v1187_v17 = vld [vmem:[#allocation7] ss:$0 sm:$0xff]  ;;  %v1186_v25 = vld [vmem:[#allocation8] ss:$0 sm:$0xff]  ;;  %s1439_s5 = smov 96  }
  0x43   : > { %s1081_s13 = sshll.u32 %s423_s20, 4  ;;  %s1440_s17 = smov 88  }
  0x44   : > { %s1441_s22 = smov 104   ;;  %s1442_s18 = smov 112  }
  0x45   : > { %s1025_s15 = sshll.u32 %s1606_s25, 5  ;;  %s1443_s29 = smov 72  }
  0x46   : > { %s426_s2 = scalar_lea.vmem %s1789_s0, %s1081_s13  ;;  %s1664_s20 = scalar_lea.vmem [#allocation11], %s1025_s15 }
  0x47   : > { %v471_v14 = vld [vmem:[%s426_s2] sm:$0xff]  ;;  %v472_v15 = vld [vmem:[%s426_s2 + $0x8] sm:$0xff]  ;;  %s1444_s27 = smov 80   ;;  %s1775_s13 = smov 8  }
  0x48   : > { %527 = vmatpush.bf16.xpose.msra.mxu1 %v517_v6  ;;  %v473_v16 = vpack.c.bf16 %v472_v15, %v471_v14  ;;  %s1446_s14 = smov 24   ;;  %s1447_s28 = smov 16  }
  0x49   : > { %465 = vmatpush.bf16.xpose.msra.mxu0 %v453_v7  ;;  %s1345_s24 = scalar_lea.hbm %s1773_s9, 64 }
  0x50   : > { %528 = vmatpush.bf16.xpose.msra.mxu1 %v514_v11  ;;  %1036 = vmatmul.msk.bf16.vlgmr.msra.gmra.mxu0 %vm448_vm1, %v429_v10 }
  0x58   : > { %529 = vmatpush.bf16.xpose.msra.mxu1 %v511_v13 }
  0x5f   : > { %1053 = vmatmul.msk.bf16.vlgmr.msra.gmra.mxu1 %vm506_vm0, %v473_v16 }
  0xcd   : > { %v467_v18 = vpop.f32.mrf.mxu0 }
  0xce   : > { %v468_v19 = vadd.f32 %v1187_v17, %v467_v18 }
  0xd0   : > { %v536_v20 = vpack.c.bf16 %v468_v19, %v468_v19 }
  0xd2   : > { %v599_v21 = vunpack.c.l.b16 %v536_v20 }
  0xd4   : > { %v600_v22 = vpack.c.b16 %v599_v21, %v599_v21 }
  0xd5   : > { %v469_v23 = vpop.f32.mrf.mxu0 }
  0xd6   : > { %601 = vrot.lane.b32.xlu2 %v600_v22, %s1438_s3 }
  0xdc   : > { %v531_v24 = vpop.f32.mrf.mxu1 }
  0xdd   : > { %v532_v26 = vadd.f32 %v1186_v25, %v531_v24 }
  0xdf   : > { %v537_v28 = vpack.c.bf16 %v532_v26, %v532_v26 }
  0xe1   : > { %v541_v31 = vunpack.c.l.b16 %v537_v28 }
  0xe4   : > { %v533_v27 = vpop.f32.mrf.mxu1 }
  0xe5   : > { %v534_v29 = vadd.f32 %v1186_v25, %v533_v27 }
  0xe7   : > { %v538_v30 = vpack.c.bf16 %v534_v29, %v534_v29 }
  0xe9   : > { %v542_v32 = vunpack.c.l.b16 %v538_v30 }
  0xeb   : > { %v1649_v33 = vpack.c.b16 %v542_v32, %v541_v31 }
  0xed   : > { %579 = vrot.lane.b32.xlu1 %v1649_v33, %s1439_s5  ;;  %v549_v34 = vsel %vm544_vm2, %v1649_v33, 0 }
  0xee   : > { %558 = vmatpush.bf16.xpose.msra.mxu2 %v549_v34 }
  0xf5   : > { %603 = vrot.lane.b32.xlu1 %v1649_v33, %s1438_s3  ;;  %1054 = vmatmul.msk.bf16.vlgmr.msra.gmra.mxu2 %vm544_vm2, %v536_v20 }
  0xfd   : > { %639 = vrot.lane.b32.xlu1 %v1649_v33, %s1440_s17 }
 0x105   : > { %717 = vrot.lane.b32.xlu1 %v1649_v33, %s1441_s22 }
 0x10d   : > { %658 = vrot.lane.b32.xlu1 %v600_v22, %s1442_s18 }
 0x115   : > { %715 = vrot.lane.b32.xlu1 %v600_v22, %s1441_s22  ;;  %s1090_s22 = sshll.u32 %s1523_s16, 5 }
 0x130   : > { %v602_v54 = vpop.permute.xlu2 %601 }
 0x15f   : > { %v580_v35 = vpop.permute.xlu1 %579 }
 0x160   : > { %592 = vmatpush.bf16.msra.mxu3 %v580_v35 }
 0x167   : > { %v604_v36 = vpop.permute.xlu1 %603 }
 0x168   : > { %v609_v37 = vsel %vm544_vm2, %v604_v36, 0 }
 0x169   : > { %618 = vmatpush.bf16.xpose.msrb.mxu3 %v609_v37 }
 0x16f   : > { %v640_v38 = vpop.permute.xlu1 %639 }
 0x170   : > { %652 = vmatpush.bf16.msrb.mxu2 %v640_v38 }
 0x177   : > { %v718_v39 = vpop.permute.xlu1 %717 }
 0x178   : > { %v723_v40 = vsel %vm544_vm2, %v718_v39, 0  ;;  %v560_v41 = vpop.f32.mrf.mxu2 }
 0x179   : > { %v564_v42 = vmul.f32 0.35355338, %v560_v41  ;;  %732 = vmatpush.bf16.xpose.msra.mxu2 %v723_v40 }
 0x17b   : > { %v566_v43 = vsel %vm565_vm3, %v564_v42, -inf }
 0x17c   : > { %567 = vmax.xlane.f32.xlu0 %v566_v43 }
 0x17f   : > { %v659_v6 = vpop.permute.xlu1 %658 }
 0x180   : > { %v562_v44 = vpop.f32.mrf.mxu2 }
 0x181   : > { %v1089_v44 = vld [vmem:[%s1770_s6 + $0x8] sm:$0xff] }
 0x187   : > { %v716_v9 = vpop.permute.xlu1 %715 }
 0x1ef   : > { %v568_v45 = vpop.xlane.xlu0 %567 }
 0x1f0   : > { %v569_v46 = vsub.f32 %v564_v42, %v568_v45  ;;  %v813_v45 = vsel %vm448_vm1, %v1089_v44, 0 }
 0x1f1   : > { %821 = vmatpush.bf16.xpose.msrb.mxu1 %v813_v45 }
 0x1f2   : > { %v570_v47 = vmul.f32 1.442695, %v569_v46  ;;  %v1088_v46 = vld [vmem:[%s1770_s6] sm:$0xff] }
 0x1f4   : > { %1189 = vpow2.f32 %v570_v47  ;;  %v810_v47 = vsel %vm448_vm1, %v1088_v46, 0 }
 0x1f9   : > { %822 = vmatpush.bf16.xpose.msrb.mxu1 %v810_v47 }
 0x1fa   : > { %v1190_v48 = vpop.eup %1189 }
 0x1fb   : > { %v572_v49 = vsel %vm565_vm3, %v1190_v48, 0.0 }
 0x1fc   : > { %573 = vadd.xlane.f32.xlu0 %v572_v49 }
 0x26f   : > { %v574_v50 = vpop.xlane.xlu0 %573 }
 0x270   : > { %1191 = vrcp.f32 %v574_v50 }
 0x276   : > { %v1192_v51 = vpop.eup %1191 }
 0x277   : > { %v576_v52 = vmul.f32 %v1192_v51, %v1190_v48 }
 0x279   : > { %577 = vst.msk [vmem:[%s1664_s20] sm:$0xff] %vm565_vm3, %v576_v52  ;;  %v578_v53 = vpack.c.bf16 %v576_v52, %v576_v52 }
 0x27b   : > { %1055 = vmatmul.msk.bf16.vlgmr.msra.gmra.mxu3 %vm565_vm3, %v578_v53 }
 0x28b   : > { %1056 = vmatmul.msk.bf16.vlgmr.msrb.gmra.mxu3 %vm544_vm2, %v602_v54 }
 0x2fe   : > { %v1670_v55 = vpop.f32.mrf.mxu3 }
 0x306   : > { %v596_v56 = vpop.f32.mrf.mxu3 }
 0x30e   : > { %v620_v57 = vpop.f32.mrf.mxu3 }
 0x30f   : > { %v624_v58 = vmul.f32 0.35355338, %v620_v57 }
 0x311   : > { %v625_v59 = vsel %vm565_vm3, %v624_v58, -inf }
 0x312   : > { %626 = vmax.xlane.f32.xlu2 %v625_v59 }
 0x316   : > { %v622_v60 = vpop.f32.mrf.mxu3 }
 0x385   : > { %v627_v61 = vpop.xlane.xlu2 %626 }
 0x386   : > { %v628_v62 = vsub.f32 %v624_v58, %v627_v61 }
 0x388   : > { %v629_v63 = vmul.f32 1.442695, %v628_v62 }
 0x38a   : > { %1193 = vpow2.f32 %v629_v63 }
 0x390   : > { %v1194_v0 = vpop.eup %1193 }
 0x391   : > { %v631_v1 = vsel %vm565_vm3, %v1194_v0, 0.0 }
 0x392   : > { %632 = vadd.xlane.f32.xlu0 %v631_v1 }
 0x3a6   : > { %660 = vrot.lane.b32.xlu0 %v1649_v33, %s1442_s18 }
 0x405   : > { %v633_v2 = vpop.xlane.xlu0 %632 }
 0x406   : > { %1195 = vrcp.f32 %v633_v2 }
 0x40c   : > { %v1196_v3 = vpop.eup %1195 }
 0x40d   : > { %v635_v4 = vmul.f32 %v1196_v3, %v1194_v0 }
 0x40f   : > { %1057 = vst.msk [vmem:[%s1664_s20 + $0x8] sm:$0xff] %vm565_vm3, %v635_v4  ;;  %v638_v5 = vpack.c.bf16 %v635_v4, %v635_v4 }
 0x411   : > { %1058 = vmatmul.msk.bf16.vlgmr.msrb.gmra.mxu2 %vm565_vm3, %v638_v5 }
 0x418   : > { %v661_v7 = vpop.permute.xlu0 %660 }
 0x419   : > { %v666_v8 = vsel %vm544_vm2, %v661_v7, 0 }
 0x41a   : > { %675 = vmatpush.bf16.xpose.msrb.mxu0 %v666_v8 }
 0x421   : > { %1059 = vmatmul.msk.bf16.vlgmr.msrb.gmra.mxu0 %vm544_vm2, %v659_v6  ;;  %1062 = vmatmul.msk.bf16.vlgmr.msra.gmra.mxu2 %vm544_vm2, %v716_v9 }
 0x494   : > { %v654_v10 = vpop.f32.mrf.mxu2 }
 0x49c   : > { %v656_v11 = vpop.f32.mrf.mxu2 }
 0x49e   : > { %v677_v12 = vpop.f32.mrf.mxu0 }
 0x49f   : > { %v681_v13 = vmul.f32 0.35355338, %v677_v12 }
 0x4a1   : > { %v682_v14 = vsel %vm565_vm3, %v681_v13, -inf }
 0x4a2   : > { %683 = vmax.xlane.f32.xlu0 %v682_v14 }
 0x4a4   : > { %v734_v15 = vpop.f32.mrf.mxu2 }
 0x4a5   : > { %v738_v16 = vmul.f32 0.35355338, %v734_v15 }
 0x4a6   : > { %v679_v17 = vpop.f32.mrf.mxu0 }
 0x4a7   : > { %v739_v18 = vsel %vm565_vm3, %v738_v16, -inf }
 0x4a8   : > { %740 = vmax.xlane.f32.xlu1 %v739_v18 }
 0x4ac   : > { %v736_v19 = vpop.f32.mrf.mxu2 }
 0x4b6   : > { %753 = vrot.lane.b32.xlu0 %v1649_v33, %s1443_s29  ;;  %s860_s29 = scalar_lea.hbm %s1773_s9, %s1090_s22 }
 0x515   : > { %v684_v20 = vpop.xlane.xlu0 %683 }
 0x516   : > { %v685_v21 = vsub.f32 %v681_v13, %v684_v20 }
 0x518   : > { %v686_v22 = vmul.f32 1.442695, %v685_v21 }
 0x51a   : > { %1197 = vpow2.f32 %v686_v22 }
 0x51b   : > { %v741_v23 = vpop.xlane.xlu1 %740 }
 0x51c   : > { %v742_v24 = vsub.f32 %v738_v16, %v741_v23 }
 0x51e   : > { %v743_v25 = vmul.f32 1.442695, %v742_v24 }
 0x520   : > { %v1198_v26 = vpop.eup %1197  ;;  %1199 = vpow2.f32 %v743_v25 }
 0x521   : > { %v688_v27 = vsel %vm565_vm3, %v1198_v26, 0.0 }
 0x522   : > { %689 = vadd.xlane.f32.xlu2 %v688_v27 }
 0x526   : > { %v1200_v28 = vpop.eup %1199 }
 0x527   : > { %v745_v30 = vsel %vm565_vm3, %v1200_v28, 0.0 }
 0x528   : > { %v754_v29 = vpop.permute.xlu0 %753 }
 0x529   : > { %766 = vmatpush.bf16.msra.mxu0 %v754_v29 }
 0x52a   : > { %746 = vadd.xlane.f32.xlu2 %v745_v30 }
 0x542   : > { %696 = vrot.lane.b32.xlu2 %v1649_v33, %s1444_s27  ;;  %s861_s27 = sshll.u32 %s1664_s20, 4  ;;  %s862_s27 = int_to_ptr.vmem [resolvable:$true] %s861_s27 }
 0x54a   : > { %773 = vrot.lane.b32.xlu2 %v654_v10, %s1775_s13 }
 0x595   : > { %v690_v31 = vpop.xlane.xlu2 %689 }
 0x596   : > { %1201 = vrcp.f32 %v690_v31 }
 0x59c   : > { %v1202_v32 = vpop.eup %1201 }
 0x59d   : > { %v692_v34 = vmul.f32 %v1202_v32, %v1198_v26  ;;  %v747_v35 = vpop.xlane.xlu2 %746 }
 0x59e   : > { %1203 = vrcp.f32 %v747_v35 }
 0x59f   : > { %1060 = vst.msk [vmem:[%s1664_s20 + $0x10] sm:$0xff] %vm565_vm3, %v692_v34  ;;  %v695_v39 = vpack.c.bf16 %v692_v34, %v692_v34 }
 0x5a4   : > { %v1204_v36 = vpop.eup %1203 }
 0x5a5   : > { %v749_v37 = vmul.f32 %v1204_v36, %v1200_v28  ;;  %v697_v38 = vpop.permute.xlu2 %696 }
 0x5a6   : > { %709 = vmatpush.bf16.msra.mxu3 %v697_v38 }
 0x5a7   : > { %1063 = vst.msk [vmem:[%s1664_s20 + $0x18] sm:$0xff] %vm565_vm3, %v749_v37  ;;  %v752_v40 = vpack.c.bf16 %v749_v37, %v749_v37 }
 0x5a9   : > { %1061 = vmatmul.msk.bf16.vlgmr.msra.gmra.mxu3 %vm565_vm3, %v695_v39  ;;  %1064 = vmatmul.msk.bf16.vlgmr.msra.gmra.mxu0 %vm565_vm3, %v752_v40 }
 0x5ad   : > { %v774_v48 = vpop.permute.xlu2 %773 }
 0x5ae   : > { %v784_v49 = vsel %vm544_vm2, %v1670_v55, %v774_v48 }
 0x626   : > { %v768_v33 = vpop.f32.mrf.mxu0 }
 0x627   : > { %781 = vrot.lane.b32.xlu2 %v768_v33, %s1446_s14  ;;  %s863_s14 = sshll.u32 %s860_s29, 4  ;;  %s864_s14 = int_to_ptr.hbm [resolvable:$true] %s863_s14 }
 0x628   : > { %s1339_s2 = sshra.s32 %s864_s14, 4  ;;  %s1340_s2 = int_to_ptr.hbm [resolvable:$true] %s1339_s2 }
 0x629   : > { %s1341_s3 = scalar_lea.hbm %s1340_s2, 32  ;;  %p1346_p8 = scmp.lt.s32.totalorder %s1340_s2, %s1773_s9 }
 0x62a   : > { %p1342_p3 = scmp.ne.s32.totalorder %s1340_s2, %s1341_s3  ;;  %p1347_p7 = scmp.lt.s32.totalorder %s1345_s24, %s1341_s3 }
 0x62c   : > { %v711_v41 = vpop.f32.mrf.mxu3  ;;  %p1343_p5 = pnand %p1342_p3, %p1575_p13  ;;  %p1348_p9 = por %p1347_p7, %p1346_p8 }
 0x62d   : > { %777 = vrot.lane.b32.xlu1 %v711_v41, %s1447_s28  ;;  %s835_s28 = scalar_lea.sflag [#allocation12], %s1606_s25 }
 0x62e   : > { %v770_v42 = vpop.f32.mrf.mxu0  ;;  %p1344_p12 = pneg %p1343_p5 }
 0x630   : > { %p1349_p10 = pnand %p1348_p9, %p1344_p12 }
 0x634   : > { %v713_v43 = vpop.f32.mrf.mxu3 }
 0x681   : > { %v782_v51 = vpop.permute.xlu2 %781 }
 0x69f   : > { %v778_v50 = vpop.permute.xlu1 %777 }
 0x6a0   : > { %v785_v52 = vsel %vm565_vm3, %v784_v49, %v778_v50 }
 0x6a1   : > { %v786_v53 = vsel %vm506_vm0, %v785_v52, %v782_v51 }
 0x6a2   : > { %v787_v54 = vpack.c.bf16 %v786_v53, %v786_v53 }
 0x6a4   : > { %1073 = vmatmul.msk.bf16.vlgmr.msrb.gmra.mxu1 %vm448_vm1, %v787_v54 }
 0x6a5   : > { %1352 = shalt.err (!%p1349_p10)
}
 0x6a6   : > { %s1448_s20 = smov 128   ;;  %s1790_s22 = smov 8   ;;  %v1188_v55 = vld [vmem:[%s1771_s7] ss:$0 sm:$0xff] }
 0x6a7   : > { %1106 = dma.vmem_to_hbm [thread:$0]  (%p1575_p13), %s862_s27, 512, %s864_s14, %s835_s28, %s1448_s20, %s1448_s20, %s1790_s22  }
 0x6a8   : > { %s1076_s18 = sshll.u32 %s1523_s16, 3  ;;  %s1791_s24 = sshll.u32 %s1606_s25, 3 }
 0x6a9   : > { %s845_s5 = scalar_lea.hbm %s1772_s8, %s1076_s18  ;;  %s414_s2 = scalar_lea.vmem [#allocation10], %s1791_s24 }
 0x6aa   : > { %s847_s3 = sshll.u32 %s414_s2, 4  ;;  %s849_s17 = sshll.u32 %s845_s5, 4  ;;  %s848_s3 = int_to_ptr.vmem [resolvable:$true] %s847_s3  ;;  %s850_s17 = int_to_ptr.hbm [resolvable:$true] %s849_s17 }
 0x6ab   : > { %s830_s16 = scalar_lea.sflag [#allocation4], %s1606_s25  ;;  %s1367_s27 = sshra.s32 %s850_s17, 4  ;;  %s1368_s27 = int_to_ptr.hbm [resolvable:$true] %s1367_s27 }
 0x6ac   : > { %s1369_s14 = scalar_lea.hbm %s1368_s27, 8  ;;  %s1373_s22 = scalar_lea.hbm %s1772_s8, 16 }
 0x6ad   : > { %p1370_p11 = scmp.ne.s32.totalorder %s1368_s27, %s1369_s14  ;;  %p1374_p6 = scmp.lt.s32.totalorder %s1368_s27, %s1772_s8 }
 0x6ae   : > { %p1375_p1 = scmp.lt.s32.totalorder %s1373_s22, %s1369_s14 }
 0x6af   : > { %p1371_p0 = pnand %p1370_p11, %p1575_p13 }
 0x6b0   : > { %p1376_p3 = por %p1375_p1, %p1374_p6 }
 0x6b1   : > { %p1372_p2 = pneg %p1371_p0 }
 0x6b3   : > { %p1377_p5 = pnand %p1376_p3, %p1372_p2 }
 0x721   : > { %v824_v56 = vpop.f32.mrf.mxu1 }
 0x722   : > { %v825_v57 = vadd.f32 %v1188_v55, %v824_v56 }
 0x724   : > { %828 = vst.msk [vmem:[%s414_s2] sm:$0xff] %vm448_vm1, %v825_v57 }
 0x725   : > { %1380 = shalt.err (!%p1377_p5)
}
 0x726   : > { %1105 = dma.vmem_to_hbm [thread:$0]  (%p1575_p13), %s848_s3, 128, %s850_s17, %s830_s16  }
 0x729   : > { %v826_v58 = vpop.f32.mrf.mxu1 }
 0x72a PF: > { %s878_s25 = sand.u32 1, %s1419_s30   ;;  %p1792_p12 = scmp.ge.s32.totalorder %s1431_s12, 2 }
 0x72b   : > { %s879_s29 = scalar_lea.sflag [#allocation4], %s878_s25 }
 0x72c   : > { %p1124_p8 = pnand %p1792_p12, %p1580_p4 }
 0x72e   : > { %p1125_p7 = pneg %p1124_p8 }
 0x730   : > { %1410 = dma.done.wait (%p1125_p7), %s879_s29, 128  }
 0x731   : > { %1412 = vsyncadd (%p1125_p7), %s879_s29, 4294967168  ;;  %s889_s5 = scalar_lea.sflag [#allocation12], %s878_s25 }
 0x732   : > { %1414 = dma.done.wait (%p1125_p7), %s889_s5, 512  }
 0x733   : > { %1416 = vsyncadd (%p1125_p7), %s889_s5, 4294966784  ;;  %p28_p13 = scmp.ge.s32.totalorder %s1555_s21, 4   ;;  %s1793_s30 = smov %s1423_s10 }
 0x734   : > { %s1794_s10 = smov %s1427_s11  ;;  %s1795_s11 = smov %s1567_s19 }
 0x735   : > { %s1796_s12 = smov %s1555_s21  ;;  %30 = sbr.rel (!%p28_p13) target bundleno = 14 (0xe), region = 132 }
 0x73a   :  { %895 = vsyncpa [#allocation3], 1 }
 0x73b   :  { %897 = vsyncpa [#allocation3 + $0x1], 1 }
 0x73c   :  { %898 = vsyncpa [#allocation6], 1 }
 0x73d   :  { %899 = vsyncpa [#allocation9], 1 }
 0x73e   :  { %900 = vsyncpa [#allocation4], 1 }
 0x73f   :  { %902 = vsyncpa [#allocation4 + $0x1], 1 }
 0x740   :  { %903 = vsyncpa [#allocation12], 1 }
 0x741   :  { %905 = vsyncpa [#allocation12 + $0x1], 1 }

</bundles_post_ra>
